<compile_context>
chip_gen: v5e
topology: v5e:2x2
jax: 0.10.0
libtpu: 0.0.40
codegen_flags: <defaults>
</compile_context>

<pallas_src>
import math

import jax
import jax.numpy as jnp
from jax.experimental import pallas as pl
from jax.experimental.pallas import tpu as pltpu


def masked_gcn_kernel(adj_ref, mask_ref, feat_ref, w_ref, out_ref):
    # support = feat @ W : (tile_nodes, in_feats) x (in_feats, out_pad)   (MXU)
    support = jnp.dot(feat_ref[...], w_ref[...],
                      preferred_element_type=jnp.float32)
    # sigmoid on the diagonal adjacency block only (EUP), times the shared
    # block-diagonal mask tile (VPU).  Cross-graph entries inside the tile are
    # multiplied by exact zeros, so semantics match the dense formulation.
    adj_masked = jax.nn.sigmoid(adj_ref[...].astype(jnp.float32)) * mask_ref[...]
    # aggregation: (tile_nodes, tile_nodes) x (tile_nodes, out_pad)       (MXU)
    out_ref[...] = jnp.dot(adj_masked, support,
                           preferred_element_type=jnp.float32).astype(out_ref.dtype)


def _round_up(x, m):
    return (x + m - 1) // m * m


def symmetric_masked_graph_conv(adj, feat, weight, raw_edge_weight,
                                num_nodes_per_graph):
    """Forward pass matching SymmetricMaskedGraphConv.forward (no activation)."""
    total_nodes, in_feats = feat.shape
    out_feats = weight.shape[1]
    n = num_nodes_per_graph
    num_graphs = total_nodes // n

    # ---- tile geometry ----------------------------------------------------
    # Pack enough graphs per grid step that the per-step node count is a
    # multiple of 128: lane-dense adjacency / mask / output tiles and a
    # full-width MXU contraction for the aggregation matmul (works on the
    # 128-wide v5e MXU; on v6e/v7x the factor could be doubled to 256).
    tile_graphs = 128 // math.gcd(n, 128)
    tile_nodes = tile_graphs * n
    num_groups = -(-num_graphs // tile_graphs)          # cdiv
    padded_nodes = num_groups * tile_graphs * n
    out_pad = _round_up(out_feats, 128)                 # lane-dense stores

    # ---- glue (tiny, O(tile^2), plain JAX) ---------------------------------
    sym = (raw_edge_weight + raw_edge_weight.T) * 0.5
    mask = sym + jnp.eye(n, dtype=sym.dtype)
    # One shared block-diagonal mask tile covering `tile_graphs` graphs; the
    # same tile is reused by every grid step (index_map -> (0, 0)).
    tile_mask = jnp.kron(jnp.eye(tile_graphs, dtype=mask.dtype), mask)

    pad_n = padded_nodes - total_nodes
    adj_p = jnp.pad(adj, ((0, pad_n), (0, pad_n))) if pad_n else adj
    feat_p = jnp.pad(feat, ((0, pad_n), (0, 0))) if pad_n else feat
    w_p = (jnp.pad(weight, ((0, 0), (0, out_pad - out_feats)))
           if out_pad != out_feats else weight)

    flops = (2 * padded_nodes * in_feats * out_pad
             + 2 * num_groups * tile_nodes * tile_nodes * out_pad)
    bytes_accessed = 4 * (num_groups * tile_nodes * tile_nodes   # adj diag blocks
                          + tile_nodes * tile_nodes              # shared mask tile
                          + padded_nodes * in_feats              # feat
                          + in_feats * out_pad                   # weight
                          + padded_nodes * out_pad)              # output
    cost = pl.CostEstimate(flops=flops,
                           transcendentals=num_groups * tile_nodes * tile_nodes,
                           bytes_accessed=bytes_accessed)

    out = pl.pallas_call(
        masked_gcn_kernel,
        out_shape=jax.ShapeDtypeStruct((padded_nodes, out_pad), feat.dtype),
        grid=(num_groups,),
        in_specs=[
            # only this group's diagonal block of the dense adjacency
            pl.BlockSpec((tile_nodes, tile_nodes), lambda g: (g, g)),
            # shared block-diagonal mask tile (never re-fetched)
            pl.BlockSpec((tile_nodes, tile_nodes), lambda g: (0, 0)),
            # this group's node features
            pl.BlockSpec((tile_nodes, in_feats), lambda g: (g, 0)),
            # shared (lane-padded) weight
            pl.BlockSpec((in_feats, out_pad), lambda g: (0, 0)),
        ],
        out_specs=pl.BlockSpec((tile_nodes, out_pad), lambda g: (g, 0)),
        compiler_params=pltpu.CompilerParams(
            dimension_semantics=("parallel",),   # graph groups are independent
            vmem_limit_bytes=32 * 1024 * 1024,
        ),
        cost_estimate=cost,
    )(adj_p, tile_mask, feat_p, w_p)

    # strip node / feature padding so downstream shapes match the module
    return out[:total_nodes, :out_feats]


def reference_forward(adj, feat, weight, raw_edge_weight, num_nodes_per_graph):
    """Pure-JAX reference mirroring the PyTorch forward exactly."""
    total_nodes = feat.shape[0]
    num_graphs = total_nodes // num_nodes_per_graph
    sym = (raw_edge_weight + raw_edge_weight.T) / 2.0
    mask = sym + jnp.eye(num_nodes_per_graph, dtype=sym.dtype)
    batch_mask = jnp.kron(jnp.eye(num_graphs, dtype=mask.dtype), mask)
    adj_masked = jax.nn.sigmoid(adj) * batch_mask
    support = feat @ weight
    return adj_masked @ support


if __name__ == "__main__":
    # Small deterministic setup consistent with the module:
    #   num_nodes_per_graph = 8, 2 graphs in the batch -> 16 total nodes
    #   in_feats = 16, out_feats = 32
    num_nodes_per_graph = 8
    num_graphs = 2
    total_nodes = num_nodes_per_graph * num_graphs
    in_feats = 16
    out_feats = 32

    key = jax.random.PRNGKey(0)
    k_w, k_e, k_f = jax.random.split(key, 3)

    # reset_parameters(): uniform(-stdv, stdv), stdv = 1/sqrt(out_feats)
    stdv = 1.0 / jnp.sqrt(jnp.float32(out_feats))
    weight = jax.random.uniform(k_w, (in_feats, out_feats), jnp.float32,
                                minval=-stdv, maxval=stdv)
    raw_edge_weight = jax.random.uniform(
        k_e, (num_nodes_per_graph, num_nodes_per_graph), jnp.float32,
        minval=-stdv, maxval=stdv)

    # Node features [total_nodes, in_feats]
    feat = jax.random.normal(k_f, (total_nodes, in_feats), jnp.float32)

    # Deterministic dense adjacency (binary, ring within each subgraph),
    # standing in for graph.adjacency_matrix(...).todense().
    idx = jnp.arange(num_nodes_per_graph)
    ring = (jnp.zeros((num_nodes_per_graph, num_nodes_per_graph), jnp.float32)
            .at[idx, (idx + 1) % num_nodes_per_graph].set(1.0)
            .at[(idx + 1) % num_nodes_per_graph, idx].set(1.0))
    adj = jnp.kron(jnp.eye(num_graphs, dtype=jnp.float32), ring)

    out = symmetric_masked_graph_conv(adj, feat, weight, raw_edge_weight,
                                      num_nodes_per_graph)
    out = jax.block_until_ready(out)

    ref = reference_forward(adj, feat, weight, raw_edge_weight,
                            num_nodes_per_graph)
    assert out.shape == (total_nodes, out_feats)
    assert jnp.allclose(out, ref, atol=1e-5, rtol=1e-5)

    print("KERNEL_OK")
</pallas_src>

<mosaic_0001>
module attributes {stable_mosaic.version = 11 : i64} {
  func.func @masked_gcn_kernel(%arg0: i32, %arg1: memref<128x128xf32, #tpu.memory_space<vmem>>, %arg2: memref<128x128xf32, #tpu.memory_space<vmem>>, %arg3: memref<128x16xf32, #tpu.memory_space<vmem>>, %arg4: memref<16x128xf32, #tpu.memory_space<vmem>>, %arg5: memref<128x128xf32, #tpu.memory_space<vmem>>) attributes {dimension_semantics = [#tpu.dimension_semantics<parallel>], iteration_bounds = array<i64: 1>, scalar_prefetch = 0 : i64, scratch_operands = 0 : i64, tpu.core_type = #tpu.core_type<tc>, window_params = [{transform_indices = @transform_0, window_bounds = array<i64: 128, 128>}, {pipeline_mode = #tpu.pipeline_mode<synchronous>, transform_indices = @transform_1, window_bounds = array<i64: 128, 128>}, {transform_indices = @transform_2, window_bounds = array<i64: 128, 16>}, {pipeline_mode = #tpu.pipeline_mode<synchronous>, transform_indices = @transform_3, window_bounds = array<i64: 16, 128>}, {transform_indices = @transform_4, window_bounds = array<i64: 128, 128>}]} {
    %c0 = arith.constant 0 : index
    %c0_0 = arith.constant 0 : index
    %0 = vector.load %arg3[%c0, %c0_0] : memref<128x16xf32, #tpu.memory_space<vmem>>, vector<128x16xf32>
    %c0_1 = arith.constant 0 : index
    %c0_2 = arith.constant 0 : index
    %1 = vector.load %arg4[%c0_1, %c0_2] : memref<16x128xf32, #tpu.memory_space<vmem>>, vector<16x128xf32>
    %cst = arith.constant dense<0.000000e+00> : vector<128x128xf32>
    %2 = tpu.matmul %0, %1, %cst {dimension_numbers = #tpu.dot_dimension_numbers<[1], [0], [0], [1], [0, 0, 1, 1], [], []>} : vector<128x16xf32>, vector<16x128xf32>, vector<128x128xf32> -> vector<128x128xf32>
    %c0_3 = arith.constant 0 : index
    %c0_4 = arith.constant 0 : index
    %3 = vector.load %arg1[%c0_3, %c0_4] : memref<128x128xf32, #tpu.memory_space<vmem>>, vector<128x128xf32>
    %4 = arith.negf %3 : vector<128x128xf32>
    %5 = math.exp %4 : vector<128x128xf32>
    %cst_5 = arith.constant 1.000000e+00 : f32
    %6 = vector.broadcast %cst_5 : f32 to vector<128x128xf32>
    %7 = arith.addf %6, %5 : vector<128x128xf32>
    %8 = arith.divf %6, %7 : vector<128x128xf32>
    %c0_6 = arith.constant 0 : index
    %c0_7 = arith.constant 0 : index
    %9 = vector.load %arg2[%c0_6, %c0_7] : memref<128x128xf32, #tpu.memory_space<vmem>>, vector<128x128xf32>
    %10 = arith.mulf %8, %9 : vector<128x128xf32>
    %cst_8 = arith.constant dense<0.000000e+00> : vector<128x128xf32>
    %11 = tpu.matmul %10, %2, %cst_8 {dimension_numbers = #tpu.dot_dimension_numbers<[1], [0], [0], [1], [0, 0, 1, 1], [], []>} : vector<128x128xf32>, vector<128x128xf32>, vector<128x128xf32> -> vector<128x128xf32>
    %c0_9 = arith.constant 0 : index
    %c0_10 = arith.constant 0 : index
    %12 = vector.load %arg5[%c0_9, %c0_10] : memref<128x128xf32, #tpu.memory_space<vmem>>, vector<128x128xf32>
    tpu.vector_store %arg5[%c0_9, %c0_10], %11 {strides = array<i32>} : memref<128x128xf32, #tpu.memory_space<vmem>>, vector<128x128xf32>,
    return
  }
  func.func @transform_0(%arg0: i32) -> (i32, i32) {
    %c0_i32 = arith.constant 0 : i32
    return %arg0, %arg0 : i32, i32
  }
  func.func @transform_1(%arg0: i32) -> (i32, i32) {
    %c0_i32 = arith.constant 0 : i32
    %c0_i32_0 = arith.constant 0 : i32
    %c0_i32_1 = arith.constant 0 : i32
    return %c0_i32, %c0_i32_0 : i32, i32
  }
  func.func @transform_2(%arg0: i32) -> (i32, i32) {
    %c0_i32 = arith.constant 0 : i32
    %c0_i32_0 = arith.constant 0 : i32
    return %arg0, %c0_i32 : i32, i32
  }
  func.func @transform_3(%arg0: i32) -> (i32, i32) {
    %c0_i32 = arith.constant 0 : i32
    %c0_i32_0 = arith.constant 0 : i32
    %c0_i32_1 = arith.constant 0 : i32
    return %c0_i32, %c0_i32_0 : i32, i32
  }
  func.func @transform_4(%arg0: i32) -> (i32, i32) {
    %c0_i32 = arith.constant 0 : i32
    %c0_i32_0 = arith.constant 0 : i32
    return %arg0, %c0_i32 : i32, i32
  }
}

</mosaic_0001>

<bundles_post_ra>
// kernel: tpu_custom_call.1
= control target key start
LH: loop header
LB: loop body
LE: loop exit
PB: predicated region body
PF: predicated region fallthrough
CT: control target
= control target key end

     0   :  { %9 = vsyncpa [#allocation3], 0  ;;  %s1421_s0 = inlined_call_operand.vmem [shape: f32[128,128], index: 0, kind: input, shape index: {}]   ;;  %s1422_s1 = inlined_call_operand.hbm [shape: f32[128,128], index: 1, kind: input, shape index: {}]   ;;  %s1423_s2 = inlined_call_operand.vmem [shape: f32[128,16], index: 2, kind: input, shape index: {}]   ;;  %s1424_s3 = inlined_call_operand.vmem [shape: f32[16,128], index: 3, kind: input, shape index: {}]   ;;  %s1425_s4 = inlined_call_operand.hbm [shape: f32[128,128], index: 4, kind: output, shape index: {}]  }
   0x1   :  { %10 = vsyncpa [#allocation4], 0  ;;  %s17_s17 = sshll.u32 %s1422_s1, 4  ;;  %s804_s18 = smov [#allocation2]   ;;  %s18_s17 = int_to_ptr.hbm [resolvable:$true] %s17_s17 }
   0x2   :  { %s19_s19 = sshll.u32 %s804_s18, 4  ;;  %s805_s20 = smov 128   ;;  %s20_s19 = int_to_ptr.vmem [resolvable:$true] %s19_s19 }
   0x3   :  { %s806_s21 = smov 8  }
   0x4   :  { %25 = dma.hbm_to_vmem [thread:$0]  %s18_s17, 2048, %s20_s19, [#allocation3], %s805_s20, %s805_s20, %s806_s21  }
   0x5   :  { %800 = dma.done.wait [#allocation3], 2048  }
   0x6   :  { %801 = vsyncadd [#allocation3], 4294965248  ;;  %v51_v0 = vld [vmem:[%s1424_s3 + $0x8] sm:$0xff]  ;;  %v50_v1 = vld [vmem:[%s1424_s3] sm:$0xff]  ;;  %vm52_vm0 = vcmask 130048   ;;  %s605_s11 = sshll.u32 %s1425_s4, 4  ;;  %s606_s11 = int_to_ptr.hbm [resolvable:$true] %s605_s11 }
   0x7   :  { %115 = vmatpush.msra.mxu0 %v51_v0  ;;  %650 = vmatpush.msra.mxu3 %v51_v0  ;;  %v34_v2 = vld [vmem:[%s1423_s2] sm:$0xff]  ;;  %v44_v3 = vld [vmem:[%s1423_s2 + $0x50] sm:$0xff]  ;;  %v35_v4 = vld [vmem:[%s1423_s2 + $0x8] sm:$0xff] }
   0x8   :  { %v45_v5 = vld [vmem:[%s1423_s2 + $0x58] sm:$0xff]  ;;  %v36_v6 = vld [vmem:[%s1423_s2 + $0x10] sm:$0xff]  ;;  %v46_v7 = vld [vmem:[%s1423_s2 + $0x60] sm:$0xff] }
   0x9   :  { %116 = vmatpush.msra.mxu0 %v50_v1  ;;  %651 = vmatpush.msra.mxu3 %v50_v1  ;;  %v37_v8 = vld [vmem:[%s1423_s2 + $0x18] sm:$0xff]  ;;  %v47_v9 = vld [vmem:[%s1423_s2 + $0x68] sm:$0xff]  ;;  %v38_v10 = vld [vmem:[%s1423_s2 + $0x20] sm:$0xff] }
   0xa   :  { %618 = vmatmul.msk.f32.vlgmr.msra.gmra.mxu0 %vm52_vm0, %v34_v2  ;;  %628 = vmatmul.msk.f32.vlgmr.msra.gmra.mxu3 %vm52_vm0, %v44_v3  ;;  %v48_v11 = vld [vmem:[%s1423_s2 + $0x70] sm:$0xff]  ;;  %v39_v12 = vld [vmem:[%s1423_s2 + $0x28] sm:$0xff]  ;;  %v49_v13 = vld [vmem:[%s1423_s2 + $0x78] sm:$0xff] }
   0xb   :  { %v40_v14 = vld [vmem:[%s1423_s2 + $0x30] sm:$0xff]  ;;  %v41_v15 = vld [vmem:[%s1423_s2 + $0x38] sm:$0xff]  ;;  %v42_v16 = vld [vmem:[%s1423_s2 + $0x40] sm:$0xff] }
   0xc   :  { %v43_v17 = vld [vmem:[%s1423_s2 + $0x48] sm:$0xff]  ;;  %v173_v26 = vld [vmem:[%s1421_s0 + $0x38] sm:$0xff]  ;;  %v166_v29 = vld [vmem:[%s1421_s0] sm:$0xff] }
   0xd   :  { %v641_v27 = vmul.f32 -1.442695, %v173_v26  ;;  %v634_v30 = vmul.f32 -1.442695, %v166_v29  ;;  %v174_v32 = vld [vmem:[%s1421_s0 + $0x40] sm:$0xff]  ;;  %v167_v37 = vld [vmem:[%s1421_s0 + $0x8] sm:$0xff] }
   0xe   :  { %v642_v33 = vmul.f32 -1.442695, %v174_v32  ;;  %v635_v39 = vmul.f32 -1.442695, %v167_v37  ;;  %v175_v41 = vld [vmem:[%s1421_s0 + $0x48] sm:$0xff]  ;;  %v168_v47 = vld [vmem:[%s1421_s0 + $0x10] sm:$0xff] }
   0xf   :  { %688 = vpow2.f32 %v641_v27  ;;  %v643_v44 = vmul.f32 -1.442695, %v175_v41  ;;  %v636_v48 = vmul.f32 -1.442695, %v168_v47  ;;  %v176_v52 = vld [vmem:[%s1421_s0 + $0x50] sm:$0xff]  ;;  %v169_v2 = vld [vmem:[%s1421_s0 + $0x18] sm:$0xff] }
  0x10   :  { %690 = vpow2.f32 %v634_v30  ;;  %v644_v57 = vmul.f32 -1.442695, %v176_v52  ;;  %v178_v41 = vld [vmem:[%s1421_s0 + $0x60] sm:$0xff]  ;;  %v493_v52 = vld [vmem:[#allocation2 + $0x38] sm:$0xff] }
  0x11   :  { %692 = vpow2.f32 %v642_v33 }
  0x12   :  { %619 = vmatmul.msk.f32.gmra.mxu0 %vm52_vm0, %v35_v4  ;;  %629 = vmatmul.msk.f32.gmra.mxu3 %vm52_vm0, %v45_v5  ;;  %v637_v5 = vmul.f32 -1.442695, %v169_v2 }
  0x15   :  { %v689_v35 = vpop.eup %688 }
  0x16   :  { %v930_v36 = vadd.f32 1.0, %v689_v35  ;;  %v691_v38 = vpop.eup %690 }
  0x17   :  { %v938_v42 = vadd.f32 1.0, %v691_v38  ;;  %v693_v45 = vpop.eup %692 }
  0x18   :  { %694 = vrcp.f32 %v930_v36  ;;  %v944_v46 = vadd.f32 1.0, %v693_v45  ;;  %vm356_vm1 = vweird.f32 %v930_v36 }
  0x19   :  { %696 = vpow2.f32 %v635_v39  ;;  %vm251_vm4 = vweird.f32 %v938_v42 }
  0x1a   :  { %620 = vmatmul.msk.f32.gmra.mxu0 %vm52_vm0, %v36_v6  ;;  %630 = vmatmul.msk.f32.gmra.mxu3 %vm52_vm0, %v46_v7  ;;  %698 = vrcp.f32 %v938_v42  ;;  %v177_v6 = vld [vmem:[%s1421_s0 + $0x58] sm:$0xff]  ;;  %vm371_vm8 = vweird.f32 %v944_v46  ;;  %v377_v45 = vand.u32 2147483648, %v944_v46 }
  0x1b   :  { %700 = vpow2.f32 %v643_v44  ;;  %v375_v44 = vand.u32 2147483647, %v944_v46 }
  0x1c   :  { %702 = vrcp.f32 %v944_v46 }
  0x1d   :  { %704 = vpow2.f32 %v636_v48  ;;  %v180_v48 = vld [vmem:[%s1421_s0 + $0x70] sm:$0xff]  ;;  %vm1075_vm12 = vcmp.eq.f32.partialorder %v375_v44, 8.507059e+37 }
  0x1e   :  { %v949_v49 = vpop.eup %694 }
  0x1f   :  { %v697_v50 = vpop.eup %696  ;;  %v352_v54 = vmul.f32 %v949_v49, %v930_v36  ;;  %vm357_vm2 = vweird.f32 %v949_v49 }
  0x20   :  { %v957_v53 = vpop.eup %698  ;;  %v961_v56 = vadd.f32 1.0, %v697_v50  ;;  %vm991_vm3 = vmor %vm356_vm1, %vm357_vm2 }
  0x21   :  { %v701_v55 = vpop.eup %700  ;;  %v247_v58 = vmul.f32 %v957_v53, %v938_v42  ;;  %v353_v59 = vsub.f32 1.0, %v352_v54  ;;  %vm252_vm5 = vweird.f32 %v957_v53 }
  0x22   :  { %621 = vmatmul.msk.f32.gmra.mxu0 %vm52_vm0, %v37_v8  ;;  %631 = vmatmul.msk.f32.gmra.mxu3 %vm52_vm0, %v47_v9  ;;  %v965_v60 = vadd.f32 1.0, %v701_v55  ;;  %v967_v61 = vpop.eup %702  ;;  %706 = vrcp.f32 %v961_v56  ;;  %v362_v8 = vand.u32 2147483648, %v930_v36  ;;  %vm1022_vm7 = vmor %vm251_vm4, %vm252_vm5  ;;  %vm266_vm13 = vweird.f32 %v961_v56 }
  0x23   :  { %v705_v62 = vpop.eup %704  ;;  %708 = vpow2.f32 %v644_v57  ;;  %v248_v0 = vsub.f32 1.0, %v247_v58  ;;  %v354_v3 = vmul.f32 %v949_v49, %v353_v59  ;;  %v367_v4 = vmul.f32 %v967_v61, %v944_v46  ;;  %v486_v59 = vld [vmem:[#allocation2] sm:$0xff] }
  0x24   :  { %v970_v1 = vadd.f32 1.0, %v705_v62  ;;  %710 = vrcp.f32 %v965_v60  ;;  %v363_v27 = vor.u32 1.1754944e-38, %v362_v8  ;;  %vm372_vm9 = vweird.f32 %v967_v61 }
  0x25   :  { %v249_v9 = vmul.f32 %v957_v53, %v248_v0  ;;  %v646_v57 = vmul.f32 -1.442695, %v178_v41  ;;  %vm1067_vm11 = vmor %vm371_vm8, %vm372_vm9  ;;  %vm386_vm15 = vweird.f32 %v965_v60 }
  0x26   :  { %712 = vrcp.f32 %v970_v1  ;;  %v285_v33 = vand.u32 2147483647, %v970_v1 }
  0x27   :  { %714 = vpow2.f32 %v637_v5  ;;  %v250_v29 = vadd.f32 %v957_v53, %v249_v9 }
  0x28   :  { %v985_v7 = vpop.eup %706  ;;  %vm1190_vm8 = vcmp.eq.f32.partialorder %v285_v33, 8.507059e+37 }
  0x29   :  { %vm267_vm14 = vweird.f32 %v985_v7 }
  0x2a   :  { %622 = vmatmul.msk.f32.gmra.mxu0 %vm52_vm0, %v38_v10  ;;  %632 = vmatmul.msk.f32.gmra.mxu3 %vm52_vm0, %v48_v11  ;;  %v709_v10 = vpop.eup %708  ;;  %v355_v11 = vadd.f32 %v949_v49, %v354_v3 }
  0x32   :  { %623 = vmatmul.msk.f32.gmra.mxu0 %vm52_vm0, %v39_v12  ;;  %633 = vmatmul.msk.f32.gmra.mxu3 %vm52_vm0, %v49_v13  ;;  %v360_v12 = vand.u32 2147483647, %v930_v36  ;;  %v368_v13 = vsub.f32 1.0, %v367_v4  ;;  %v1079_v4 = vor.u32 1.1754944e-38, %v377_v45 }
  0x34   :  { %vm1014_vm6 = vcmp.eq.f32.partialorder %v360_v12, 8.507059e+37  ;;  %v369_v35 = vmul.f32 %v967_v61, %v368_v13 }
  0x3a   :  { %624 = vmatmul.msk.f32.gmra.mxu0 %vm52_vm0, %v40_v14 }
  0x42   :  { %625 = vmatmul.msk.f32.gmra.mxu0 %vm52_vm0, %v41_v15  ;;  %v255_v15 = vand.u32 2147483647, %v938_v42 }
  0x44   :  { %vm1031_vm10 = vcmp.eq.f32.partialorder %v255_v15, 8.507059e+37 }
  0x4a   :  { %626 = vmatmul.msk.f32.gmra.mxu0 %vm52_vm0, %v42_v16  ;;  %v645_v16 = vmul.f32 -1.442695, %v177_v6 }
  0x4c   :  { %716 = vpow2.f32 %v645_v16  ;;  %v392_v16 = vand.u32 2147483648, %v965_v60 }
  0x52   :  { %627 = vmatmul.msk.f32.gmra.mxu0 %vm52_vm0, %v43_v17  ;;  %v998_v17 = vpop.eup %710  ;;  %vm1110_vm0 = vmor %vm266_vm13, %vm267_vm14 }
  0x53   :  { %v1009_v30 = vpop.eup %712  ;;  %v382_v36 = vmul.f32 %v998_v17, %v965_v60  ;;  %vm387_vm1 = vweird.f32 %v998_v17 }
  0x54   :  { %v277_v47 = vmul.f32 %v1009_v30, %v970_v1  ;;  %vm282_vm4 = vweird.f32 %v1009_v30  ;;  %vm1151_vm5 = vmor %vm386_vm15, %vm387_vm1 }
  0x55   :  { %v383_v54 = vsub.f32 1.0, %v382_v36 }
  0x56   :  { %v278_v5 = vsub.f32 1.0, %v277_v47 }
  0x57   :  { %v384_v9 = vmul.f32 %v998_v17, %v383_v54 }
  0x58   :  { %v279_v13 = vmul.f32 %v1009_v30, %v278_v5 }
  0x87   :  { %v909_v18 = vpop.f32.mrf.mxu0 }
  0x8d   :  { %v148_v19 = vpop.f32.mrf.mxu3 }
  0x8f   :  { %v911_v20 = vpop.f32.mrf.mxu0 }
  0x95   :  { %v151_v21 = vpop.f32.mrf.mxu3 }
  0x97   :  { %v913_v22 = vpop.f32.mrf.mxu0 }
  0x9d   :  { %v154_v23 = vpop.f32.mrf.mxu3 }
  0x9f   :  { %v915_v24 = vpop.f32.mrf.mxu0 }
  0xa5   :  { %v157_v25 = vpop.f32.mrf.mxu3 }
  0xa7   :  { %v920_v28 = vpop.f32.mrf.mxu0 }
  0xad   :  { %v160_v31 = vpop.f32.mrf.mxu3 }
  0xaf   :  { %v928_v34 = vpop.f32.mrf.mxu0 }
  0xb5   :  { %v163_v40 = vpop.f32.mrf.mxu3 }
  0xb6   :  { %518 = vmatpush.msra.mxu1 %v163_v40  ;;  %652 = vmatpush.msra.mxu2 %v163_v40 }
  0xb7   :  { %653 = vmatpush.msrb.mxu3 %v163_v40  ;;  %v940_v43 = vpop.f32.mrf.mxu0 }
  0xb8   :  { %519 = vmatpush.msra.mxu1 %v160_v31  ;;  %654 = vmatpush.msra.mxu2 %v160_v31 }
  0xb9   :  { %655 = vmatpush.msrb.mxu3 %v160_v31  ;;  %v359_v31 = vsel %vm991_vm3, %v949_v49, %v355_v11  ;;  %v715_v49 = vpop.eup %714  ;;  %v272_v11 = vand.u32 2147483648, %v961_v56  ;;  %vm281_vm3 = vweird.f32 %v970_v1 }
  0xba   :  { %520 = vmatpush.msra.mxu1 %v157_v25  ;;  %656 = vmatpush.msra.mxu2 %v157_v25  ;;  %v364_v50 = vsel %vm1014_vm6, %v363_v27, %v359_v31  ;;  %v1057_v55 = vadd.f32 1.0, %v715_v49  ;;  %v717_v0 = vpop.eup %716  ;;  %v181_v27 = vld [vmem:[%s1421_s0 + $0x78] sm:$0xff] }
  0xbb   :  { %657 = vmatpush.msrb.mxu3 %v157_v25  ;;  %v170_v25 = vld [vmem:[%s1421_s0 + $0x20] sm:$0xff]  ;;  %v1073_v2 = vmul.f32 %v493_v52, %v364_v50  ;;  %v1118_v15 = vadd.f32 1.0, %v717_v0  ;;  %v273_v31 = vor.u32 1.1754944e-38, %v272_v11  ;;  %v649_v41 = vmul.f32 -1.442695, %v181_v27 }
  0xbc   :  { %521 = vmatpush.msra.mxu1 %v154_v23  ;;  %658 = vmatpush.msra.mxu2 %v154_v23  ;;  %v638_v37 = vmul.f32 -1.442695, %v170_v25  ;;  %v385_v25 = vadd.f32 %v998_v17, %v384_v9  ;;  %vm296_vm13 = vweird.f32 %v1057_v55 }
  0xbd   :  { %659 = vmatpush.msrb.mxu3 %v154_v23  ;;  %v1003_v23 = vadd.f32 1.0, %v709_v10  ;;  %vm416_vm14 = vweird.f32 %v1118_v15 }
  0xbe   :  { %522 = vmatpush.msra.mxu1 %v151_v21  ;;  %660 = vmatpush.msra.mxu2 %v151_v21 }
  0xbf   :  { %661 = vmatpush.msrb.mxu3 %v151_v21  ;;  %v951_v51 = vpop.f32.mrf.mxu0  ;;  %v262_v21 = vmul.f32 %v985_v7, %v961_v56  ;;  %718 = vrcp.f32 %v1003_v23  ;;  %vm401_vm9 = vweird.f32 %v1003_v23 }
  0xc0   :  { %523 = vmatpush.msra.mxu1 %v148_v19  ;;  %662 = vmatpush.msra.mxu2 %v148_v19  ;;  %720 = vpow2.f32 %v638_v37  ;;  %v280_v37 = vadd.f32 %v1009_v30, %v279_v13 }
  0xc1   :  { %663 = vmatpush.msrb.mxu3 %v148_v19  ;;  %v257_v19 = vand.u32 2147483648, %v938_v42  ;;  %v263_v40 = vsub.f32 1.0, %v262_v21  ;;  %v254_v42 = vsel %vm1022_vm7, %v957_v53, %v250_v29  ;;  %v1054_v53 = vadd.f32 %v967_v61, %v369_v35  ;;  %v179_v21 = vld [vmem:[%s1421_s0 + $0x68] sm:$0xff]  ;;  %vm1170_vm7 = vmor %vm281_vm3, %vm282_vm4 }
  0xc2   :  { %722 = vrcp.f32 %v1057_v55  ;;  %v287_v35 = vand.u32 2147483648, %v970_v1  ;;  %v284_v49 = vsel %vm1170_vm7, %v1009_v30, %v280_v37  ;;  %v172_v30 = vld [vmem:[%s1421_s0 + $0x30] sm:$0xff] }
  0xc3   :  { %v258_v39 = vor.u32 1.1754944e-38, %v257_v19  ;;  %v374_v8 = vsel %vm1067_vm11, %v967_v61, %v1054_v53  ;;  %724 = vpow2.f32 %v646_v57  ;;  %v487_v53 = vld [vmem:[#allocation2 + $0x8] sm:$0xff]  ;;  %v407_v57 = vand.u32 2147483648, %v1003_v23 }
  0xc4   :  { %v379_v1 = vsel %vm1075_vm12, %v1079_v4, %v374_v8 }
  0xc5   :  { %v259_v58 = vsel %vm1031_vm10, %v258_v39, %v254_v42  ;;  %v1081_v46 = vpop.eup %718  ;;  %v389_v42 = vsel %vm1151_vm5, %v998_v17, %v385_v25  ;;  %v288_v17 = vor.u32 1.1754944e-38, %v287_v35  ;;  %v408_v9 = vor.u32 1.1754944e-38, %v407_v57 }
  0xc6   :  { %v1090_v6 = vmul.f32 %v486_v59, %v259_v58  ;;  %v721_v12 = vpop.eup %720  ;;  %v397_v14 = vmul.f32 %v1081_v46, %v1003_v23  ;;  %v495_v59 = vld [vmem:[#allocation2 + $0x48] sm:$0xff]  ;;  %vm402_vm10 = vweird.f32 %v1081_v46  ;;  %v420_v25 = vand.u32 2147483647, %v1118_v15 }
  0xc7   :  { %v142_v63 = vpop.f32.mrf.mxu0  ;;  %v1128_v19 = vadd.f32 1.0, %v721_v12  ;;  %v289_v0 = vsel %vm1190_vm8, %v288_v17, %v284_v49  ;;  %vm1221_vm11 = vmor %vm401_vm9, %vm402_vm10 }
  0xc8   :  { %v1140_v29 = vpop.eup %722  ;;  %v398_v38 = vsub.f32 1.0, %v397_v14  ;;  %v300_v14 = vand.u32 2147483647, %v1057_v55  ;;  %vm1272_vm5 = vcmp.eq.f32.partialorder %v420_v25, 8.507059e+37 }
  0xc9   :  { %v725_v36 = vpop.eup %724  ;;  %v292_v44 = vmul.f32 %v1140_v29, %v1057_v55  ;;  %vm297_vm15 = vweird.f32 %v1140_v29  ;;  %vm311_vm7 = vweird.f32 %v1128_v19 }
  0xca   :  { %v399_v50 = vmul.f32 %v1081_v46, %v398_v38  ;;  %v1200_v52 = vadd.f32 1.0, %v725_v36  ;;  %vm1265_vm3 = vcmp.eq.f32.partialorder %v300_v14, 8.507059e+37 }
  0xcb   :  { %v293_v62 = vsub.f32 1.0, %v292_v44 }
  0xcc   :  { %v400_v5 = vadd.f32 %v1081_v46, %v399_v50 }
  0xcd   :  { %v294_v12 = vmul.f32 %v1140_v29, %v293_v62 }
  0xcf   :  { %v145_v26 = vpop.f32.mrf.mxu0  ;;  %v295_v32 = vadd.f32 %v1140_v29, %v294_v12 }
  0xd0   :  { %524 = vmatpush.msra.mxu1 %v145_v26  ;;  %664 = vmatpush.msra.mxu2 %v145_v26 }
  0xd1   :  { %665 = vmatpush.msrb.mxu3 %v145_v26 }
  0xd2   :  { %525 = vmatpush.msra.mxu1 %v142_v63  ;;  %666 = vmatpush.msra.mxu2 %v142_v63 }
  0xd3   :  { %667 = vmatpush.msrb.mxu3 %v142_v63  ;;  %v648_v63 = vmul.f32 -1.442695, %v180_v48  ;;  %v494_v48 = vld [vmem:[#allocation2 + $0x40] sm:$0xff] }
  0xd4   :  { %526 = vmatpush.msra.mxu1 %v951_v51  ;;  %668 = vmatpush.msra.mxu2 %v951_v51 }
  0xd5   :  { %669 = vmatpush.msrb.mxu3 %v951_v51  ;;  %v264_v51 = vmul.f32 %v985_v7, %v263_v40  ;;  %726 = vpow2.f32 %v648_v63  ;;  %v393_v40 = vor.u32 1.1754944e-38, %v392_v16  ;;  %v510_v63 = vmul.f32 %v494_v48, %v379_v1 }
  0xd6   :  { %527 = vmatpush.msra.mxu1 %v940_v43  ;;  %670 = vmatpush.msra.mxu2 %v940_v43  ;;  %728 = vrcp.f32 %v1118_v15 }
  0xd7   :  { %671 = vmatpush.msrb.mxu3 %v940_v43  ;;  %v270_v43 = vand.u32 2147483647, %v961_v56  ;;  %v265_v10 = vadd.f32 %v985_v7, %v264_v51  ;;  %v390_v56 = vand.u32 2147483647, %v965_v60  ;;  %730 = vrcp.f32 %v1128_v19 }
  0xd8   :  { %528 = vmatpush.msra.mxu1 %v928_v34  ;;  %672 = vmatpush.msra.mxu2 %v928_v34  ;;  %v422_v60 = vand.u32 2147483648, %v1118_v15 }
  0xd9   :  { %673 = vmatpush.msrb.mxu3 %v928_v34  ;;  %v171_v34 = vld [vmem:[%s1421_s0 + $0x28] sm:$0xff]  ;;  %vm1122_vm2 = vcmp.eq.f32.partialorder %v270_v43, 8.507059e+37  ;;  %vm1162_vm6 = vcmp.eq.f32.partialorder %v390_v56, 8.507059e+37  ;;  %v640_v43 = vmul.f32 -1.442695, %v172_v30  ;;  %s807_s0 = smov [#allocation5]  }
  0xda   :  { %529 = vmatpush.msra.mxu1 %v920_v28  ;;  %674 = vmatpush.msra.mxu2 %v920_v28  ;;  %v639_v26 = vmul.f32 -1.442695, %v171_v34  ;;  %v394_v54 = vsel %vm1162_vm6, %v393_v40, %v389_v42  ;;  %s603_s8 = sshll.u32 %s807_s0, 4  ;;  %s604_s8 = int_to_ptr.vmem [resolvable:$true] %s603_s8 }
  0xdb   :  { %675 = vmatpush.msrb.mxu3 %v920_v28  ;;  %v727_v39 = vpop.eup %726  ;;  %v302_v28 = vand.u32 2147483648, %v1057_v55 }
  0xdc   :  { %530 = vmatpush.msra.mxu1 %v915_v24  ;;  %676 = vmatpush.msra.mxu2 %v915_v24  ;;  %v1181_v45 = vadd.f32 1.0, %v727_v39  ;;  %732 = vpow2.f32 %v639_v26  ;;  %v1210_v58 = vpop.eup %728 }
  0xdd   :  { %677 = vmatpush.msrb.mxu3 %v915_v24  ;;  %v269_v24 = vsel %vm1110_vm0, %v985_v7, %v265_v10  ;;  %v647_v7 = vmul.f32 -1.442695, %v179_v21  ;;  %v1215_v51 = vpop.eup %730  ;;  %v412_v10 = vmul.f32 %v1210_v58, %v1118_v15  ;;  %v404_v21 = vsel %vm1221_vm11, %v1081_v46, %v400_v5 }
  0xde   :  { %531 = vmatpush.msra.mxu1 %v913_v22  ;;  %678 = vmatpush.msra.mxu2 %v913_v22  ;;  %v307_v61 = vmul.f32 %v1215_v51, %v1128_v19  ;;  %v467_v46 = vand.u32 2147483648, %v1181_v45  ;;  %vm461_vm0 = vweird.f32 %v1181_v45  ;;  %v465_v37 = vand.u32 2147483647, %v1181_v45 }
  0xdf   :  { %679 = vmatpush.msrb.mxu3 %v913_v22  ;;  %734 = vpow2.f32 %v647_v7  ;;  %v413_v26 = vsub.f32 1.0, %v412_v10  ;;  %v303_v39 = vor.u32 1.1754944e-38, %v302_v28  ;;  %vm417_vm4 = vweird.f32 %v1210_v58 }
  0xe0   :  { %532 = vmatpush.msra.mxu1 %v911_v20  ;;  %680 = vmatpush.msra.mxu2 %v911_v20  ;;  %736 = vpow2.f32 %v649_v41  ;;  %v308_v33 = vsub.f32 1.0, %v307_v61  ;;  %v468_v47 = vor.u32 1.1754944e-38, %v467_v46  ;;  %vm1296_vm8 = vcmp.eq.f32.partialorder %v465_v37, 8.507059e+37  ;;  %vm1316_vm10 = vmor %vm416_vm14, %vm417_vm4  ;;  %v490_v37 = vld [vmem:[#allocation2 + $0x20] sm:$0xff] }
  0xe1   :  { %681 = vmatpush.msrb.mxu3 %v911_v20  ;;  %v274_v20 = vsel %vm1122_vm2, %v273_v31, %v269_v24  ;;  %738 = vrcp.f32 %v1181_v45  ;;  %vm1261_vm2 = vmor %vm296_vm13, %vm297_vm15  ;;  %v414_v40 = vmul.f32 %v1210_v58, %v413_v26  ;;  %vm312_vm9 = vweird.f32 %v1215_v51 }
  0xe2   :  { %533 = vmatpush.msra.mxu1 %v909_v18  ;;  %682 = vmatpush.msra.mxu2 %v909_v18  ;;  %v733_v3 = vpop.eup %732  ;;  %v503_v4 = vmul.f32 %v487_v53, %v274_v20  ;;  %740 = vrcp.f32 %v1200_v52  ;;  %v309_v1 = vmul.f32 %v1215_v51, %v308_v33  ;;  %v299_v48 = vsel %vm1261_vm2, %v1140_v29, %v295_v32  ;;  %vm1329_vm11 = vmor %vm311_vm7, %vm312_vm9  ;;  %v497_v32 = vld [vmem:[#allocation2 + $0x58] sm:$0xff] }
  0xe3   :  { %683 = vmatpush.msrb.mxu3 %v909_v18  ;;  %555 = vmatmul.f32.vlgmr.msra.gmra.mxu2 %v1073_v2  ;;  %v405_v18 = vand.u32 2147483647, %v1003_v23  ;;  %v488_v2 = vld [vmem:[#allocation2 + $0x10] sm:$0xff]  ;;  %v511_v23 = vmul.f32 %v495_v59, %v394_v54  ;;  %v1238_v56 = vadd.f32 1.0, %v733_v3  ;;  %742 = vpow2.f32 %v640_v43 }
  0xe4   :  { %534 = vmatmul.f32.vlgmr.msra.gmra.mxu1 %v1090_v6  ;;  %v504_v34 = vmul.f32 %v488_v2, %v289_v0  ;;  %v315_v53 = vand.u32 2147483647, %v1128_v19  ;;  %v317_v54 = vand.u32 2147483648, %v1128_v19  ;;  %v415_v29 = vadd.f32 %v1210_v58, %v414_v40  ;;  %v489_v0 = vld [vmem:[#allocation2 + $0x18] sm:$0xff] }
  0xe5   :  { %vm1225_vm12 = vcmp.eq.f32.partialorder %v405_v18, 8.507059e+37  ;;  %v735_v11 = vpop.eup %734  ;;  %744 = vrcp.f32 %v1238_v56  ;;  %v500_v18 = vld [vmem:[#allocation2 + $0x70] sm:$0xff]  ;;  %v423_v3 = vor.u32 1.1754944e-38, %v422_v60  ;;  %vm431_vm13 = vweird.f32 %v1200_v52 }
  0xe6   :  { %v737_v13 = vpop.eup %736  ;;  %v1247_v24 = vadd.f32 1.0, %v735_v11  ;;  %v409_v44 = vsel %vm1225_vm12, %v408_v9, %v404_v21  ;;  %vm1334_vm12 = vcmp.eq.f32.partialorder %v315_v53, 8.507059e+37  ;;  %v318_v11 = vor.u32 1.1754944e-38, %v317_v54 }
  0xe7   :  { %v739_v16 = vpop.eup %738  ;;  %v1253_v35 = vadd.f32 1.0, %v737_v13  ;;  %v419_v19 = vsel %vm1316_vm10, %v1210_v58, %v415_v29  ;;  %v332_v46 = vand.u32 2147483648, %v1238_v56 }
  0xe8   :  { %v457_v27 = vmul.f32 %v739_v16, %v1181_v45  ;;  %v1249_v31 = vpop.eup %740  ;;  %vm462_vm1 = vweird.f32 %v739_v16  ;;  %746 = vrcp.f32 %v1247_v24  ;;  %v496_v45 = vld [vmem:[#allocation2 + $0x50] sm:$0xff]  ;;  %v424_v26 = vsel %vm1272_vm5, %v423_v3, %v419_v19 }
  0xe9   :  { %v427_v55 = vmul.f32 %v1249_v31, %v1200_v52  ;;  %v743_v42 = vpop.eup %742  ;;  %vm1285_vm6 = vmor %vm461_vm0, %vm462_vm1  ;;  %748 = vrcp.f32 %v1253_v35  ;;  %vm476_vm14 = vweird.f32 %v1253_v35  ;;  %v480_v58 = vand.u32 2147483647, %v1253_v35 }
  0xea   :  { %v458_v36 = vsub.f32 1.0, %v457_v27  ;;  %v1308_v62 = vadd.f32 1.0, %v743_v42  ;;  %vm432_vm0 = vweird.f32 %v1249_v31  ;;  %vm326_vm1 = vweird.f32 %v1238_v56 }
  0xeb   :  { %558 = vmatmul.f32.gmra.mxu2 %v510_v63  ;;  %v1290_v17 = vpop.eup %744  ;;  %v428_v30 = vsub.f32 1.0, %v427_v55  ;;  %v304_v63 = vsel %vm1265_vm3, %v303_v39, %v299_v48  ;;  %vm1379_vm4 = vmor %vm431_vm13, %vm432_vm0  ;;  %vm481_vm5 = vcmp.eq.f32.partialorder %v480_v58, 8.507059e+37  ;;  %v513_v42 = vmul.f32 %v497_v32, %v424_v26 }
  0xec   :  { %537 = vmatmul.f32.gmra.mxu1 %v503_v4  ;;  %v459_v41 = vmul.f32 %v739_v16, %v458_v36  ;;  %v322_v57 = vmul.f32 %v1290_v17, %v1238_v56  ;;  %v310_v4 = vadd.f32 %v1215_v51, %v309_v1  ;;  %750 = vrcp.f32 %v1308_v62 }
  0xed   :  { %v505_v12 = vmul.f32 %v489_v0, %v304_v63  ;;  %v429_v61 = vmul.f32 %v1249_v31, %v428_v30  ;;  %vm327_vm2 = vweird.f32 %v1290_v17  ;;  %v333_v50 = vor.u32 1.1754944e-38, %v332_v46  ;;  %v491_v30 = vld [vmem:[#allocation2 + $0x28] sm:$0xff] }
  0xee   :  { %v460_v49 = vadd.f32 %v739_v16, %v459_v41  ;;  %v1323_v43 = vpop.eup %746  ;;  %v323_v8 = vsub.f32 1.0, %v322_v57  ;;  %v314_v14 = vsel %vm1329_vm11, %v1215_v51, %v310_v4  ;;  %v437_v51 = vand.u32 2147483648, %v1200_v52 }
  0xef   :  { %v749_v9 = vpop.eup %748  ;;  %v442_v28 = vmul.f32 %v1323_v43, %v1247_v24  ;;  %v319_v33 = vsel %vm1334_vm12, %v318_v11, %v314_v14  ;;  %v430_v38 = vadd.f32 %v1249_v31, %v429_v61  ;;  %vm446_vm9 = vweird.f32 %v1247_v24  ;;  %v492_v11 = vld [vmem:[#allocation2 + $0x30] sm:$0xff] }
  0xf0   :  { %v464_v59 = vsel %vm1285_vm6, %v739_v16, %v460_v49  ;;  %v472_v13 = vmul.f32 %v749_v9, %v1253_v35  ;;  %v482_v16 = vand.u32 2147483648, %v1253_v35  ;;  %v324_v21 = vmul.f32 %v1290_v17, %v323_v8  ;;  %vm1389_vm6 = vmor %vm326_vm1, %vm327_vm2 }
  0xf1   :  { %v469_v5 = vsel %vm1296_vm8, %v468_v47, %v464_v59  ;;  %vm477_vm15 = vweird.f32 %v749_v9  ;;  %v443_v7 = vsub.f32 1.0, %v442_v28  ;;  %v330_v35 = vand.u32 2147483647, %v1238_v56 }
  0xf2   :  { %v516_v15 = vmul.f32 %v500_v18, %v469_v5  ;;  %v473_v25 = vsub.f32 1.0, %v472_v13  ;;  %v1359_v27 = vpop.eup %750  ;;  %vm1369_vm3 = vmor %vm476_vm14, %vm477_vm15  ;;  %v483_v60 = vor.u32 1.1754944e-38, %v482_v16  ;;  %v325_v55 = vadd.f32 %v1290_v17, %v324_v21 }
  0xf3   :  { %561 = vmatmul.f32.gmra.mxu2 %v511_v23  ;;  %v512_v23 = vmul.f32 %v496_v45, %v409_v44  ;;  %v337_v40 = vmul.f32 %v1359_v27, %v1308_v62  ;;  %v506_v20 = vmul.f32 %v490_v37, %v319_v33  ;;  %v438_v47 = vor.u32 1.1754944e-38, %v437_v51 }
  0xf4   :  { %540 = vmatmul.f32.gmra.mxu1 %v504_v34  ;;  %v435_v34 = vand.u32 2147483647, %v1200_v52  ;;  %576 = vmatmul.f32.vlgmr.msrb.gmra.mxu3 %v516_v15  ;;  %v474_v36 = vmul.f32 %v749_v9, %v473_v25  ;;  %v501_v52 = vld [vmem:[#allocation2 + $0x78] sm:$0xff]  ;;  %v434_v49 = vsel %vm1379_vm4, %v1249_v31, %v430_v38  ;;  %v444_v45 = vmul.f32 %v1323_v43, %v443_v7  ;;  %v498_v31 = vld [vmem:[#allocation2 + $0x60] sm:$0xff] }
  0xf5   :  { %v338_v1 = vsub.f32 1.0, %v337_v40  ;;  %v329_v53 = vsel %vm1389_vm6, %v1290_v17, %v325_v55  ;;  %vm331_vm8 = vcmp.eq.f32.partialorder %v330_v35, 8.507059e+37  ;;  %vm447_vm10 = vweird.f32 %v1323_v43 }
  0xf6   :  { %v475_v41 = vadd.f32 %v749_v9, %v474_v36  ;;  %vm436_vm7 = vcmp.eq.f32.partialorder %v435_v34, 8.507059e+37  ;;  %v452_v29 = vand.u32 2147483648, %v1247_v24  ;;  %vm341_vm11 = vweird.f32 %v1308_v62  ;;  %vm448_vm13 = vmor %vm446_vm9, %vm447_vm10 }
  0xf7   :  { %v339_v18 = vmul.f32 %v1359_v27, %v338_v1  ;;  %v439_v57 = vsel %vm436_vm7, %v438_v47, %v434_v49  ;;  %vm342_vm12 = vweird.f32 %v1359_v27  ;;  %v334_v17 = vsel %vm331_vm8, %v333_v50, %v329_v53 }
  0xf8   :  { %v479_v48 = vsel %vm1369_vm3, %v749_v9, %v475_v41  ;;  %v445_v59 = vadd.f32 %v1323_v43, %v444_v45  ;;  %v450_v63 = vand.u32 2147483647, %v1247_v24  ;;  %v347_v0 = vand.u32 2147483648, %v1308_v62  ;;  %vm343_vm14 = vmor %vm341_vm11, %vm342_vm12  ;;  %v499_v9 = vld [vmem:[#allocation2 + $0x68] sm:$0xff] }
  0xf9   :  { %v484_v56 = vsel %vm481_vm5, %v483_v60, %v479_v48  ;;  %v340_v2 = vadd.f32 %v1359_v27, %v339_v18  ;;  %v345_v3 = vand.u32 2147483647, %v1308_v62  ;;  %v514_v4 = vmul.f32 %v498_v31, %v439_v57 }
  0xfa   :  { %v517_v54 = vmul.f32 %v501_v52, %v484_v56  ;;  %v507_v5 = vmul.f32 %v491_v30, %v334_v17  ;;  %v449_v6 = vsel %vm448_vm13, %v1323_v43, %v445_v59  ;;  %vm451_vm15 = vcmp.eq.f32.partialorder %v450_v63, 8.507059e+37 }
  0xfb   :  { %564 = vmatmul.f32.gmra.mxu2 %v512_v23  ;;  %v453_v23 = vor.u32 1.1754944e-38, %v452_v29  ;;  %v348_v15 = vor.u32 1.1754944e-38, %v347_v0  ;;  %v344_v8 = vsel %vm343_vm14, %v1359_v27, %v340_v2  ;;  %vm346_vm0 = vcmp.eq.f32.partialorder %v345_v3, 8.507059e+37 }
  0xfc   :  { %543 = vmatmul.f32.gmra.mxu1 %v505_v12  ;;  %579 = vmatmul.f32.gmra.mxu3 %v517_v54 }
  0xfd   :  { %v454_v24 = vsel %vm451_vm15, %v453_v23, %v449_v6  ;;  %v349_v10 = vsel %vm346_vm0, %v348_v15, %v344_v8 }
  0xfe   :  { %v515_v34 = vmul.f32 %v499_v9, %v454_v24  ;;  %v508_v12 = vmul.f32 %v492_v11, %v349_v10 }
 0x103   :  { %567 = vmatmul.f32.gmra.mxu2 %v513_v42 }
 0x104   :  { %546 = vmatmul.f32.gmra.mxu1 %v506_v20 }
 0x10b   :  { %570 = vmatmul.f32.gmra.mxu2 %v514_v4 }
 0x10c   :  { %549 = vmatmul.f32.gmra.mxu1 %v507_v5 }
 0x113   :  { %573 = vmatmul.f32.gmra.mxu2 %v515_v34 }
 0x114   :  { %552 = vmatmul.f32.gmra.mxu1 %v508_v12 }
 0x161   :  { %v535_v62 = vpop.f32.mrf.mxu1 }
 0x162   :  { %583 = vst [vmem:[#allocation5] sm:$0xff] %v535_v62 }
 0x166   :  { %v556_v19 = vpop.f32.mrf.mxu2 }
 0x167   :  { %590 = vst [vmem:[#allocation5 + $0x38] sm:$0xff] %v556_v19 }
 0x169   :  { %v538_v43 = vpop.f32.mrf.mxu1 }
 0x16a   :  { %584 = vst [vmem:[#allocation5 + $0x8] sm:$0xff] %v538_v43 }
 0x16e   :  { %v559_v61 = vpop.f32.mrf.mxu2 }
 0x16f   :  { %591 = vst [vmem:[#allocation5 + $0x40] sm:$0xff] %v559_v61 }
 0x171   :  { %v541_v13 = vpop.f32.mrf.mxu1 }
 0x172   :  { %585 = vst [vmem:[#allocation5 + $0x10] sm:$0xff] %v541_v13 }
 0x176   :  { %v562_v14 = vpop.f32.mrf.mxu2 }
 0x177   :  { %592 = vst [vmem:[#allocation5 + $0x48] sm:$0xff] %v562_v14  ;;  %v577_v16 = vpop.f32.mrf.mxu3 }
 0x178   :  { %597 = vst [vmem:[#allocation5 + $0x70] sm:$0xff] %v577_v16 }
 0x179   :  { %v544_v28 = vpop.f32.mrf.mxu1 }
 0x17a   :  { %586 = vst [vmem:[#allocation5 + $0x18] sm:$0xff] %v544_v28 }
 0x17e   :  { %v565_v21 = vpop.f32.mrf.mxu2 }
 0x17f   :  { %593 = vst [vmem:[#allocation5 + $0x50] sm:$0xff] %v565_v21  ;;  %v580_v26 = vpop.f32.mrf.mxu3 }
 0x180   :  { %598 = vst [vmem:[#allocation5 + $0x78] sm:$0xff] %v580_v26 }
 0x181   :  { %v547_v25 = vpop.f32.mrf.mxu1 }
 0x182   :  { %587 = vst [vmem:[#allocation5 + $0x20] sm:$0xff] %v547_v25 }
 0x186   :  { %v568_v58 = vpop.f32.mrf.mxu2 }
 0x187   :  { %594 = vst [vmem:[#allocation5 + $0x58] sm:$0xff] %v568_v58 }
 0x189   :  { %v550_v51 = vpop.f32.mrf.mxu1 }
 0x18a   :  { %588 = vst [vmem:[#allocation5 + $0x28] sm:$0xff] %v550_v51 }
 0x18e   :  { %v571_v27 = vpop.f32.mrf.mxu2 }
 0x18f   :  { %595 = vst [vmem:[#allocation5 + $0x60] sm:$0xff] %v571_v27 }
 0x191   :  { %v553_v32 = vpop.f32.mrf.mxu1 }
 0x192   :  { %589 = vst [vmem:[#allocation5 + $0x30] sm:$0xff] %v553_v32 }
 0x196   :  { %v574_v33 = vpop.f32.mrf.mxu2 }
 0x197   :  { %596 = vst [vmem:[#allocation5 + $0x68] sm:$0xff] %v574_v33 }
 0x198   :  { %611 = dma.vmem_to_hbm [thread:$0]  %s604_s8, 2048, %s606_s11, [#allocation4], %s805_s20, %s805_s20, %s806_s21  }
 0x199   :  { %802 = dma.done.wait [#allocation4], 2048  }
 0x19a   :  { %803 = vsyncadd [#allocation4], 4294965248 }
 0x19b   :  { %616 = vsyncpa [#allocation3], 1 }
 0x19c   :  { %617 = vsyncpa [#allocation4], 1 }

</bundles_post_ra>
